<compile_context>
chip_gen: v7x
topology: tpu7x:2x2x1
jax: 0.10.0
libtpu: 0.0.40
codegen_flags: <defaults>
</compile_context>

<pallas_src>
import jax
import jax.numpy as jnp
from jax.experimental import pallas as pl
from jax.experimental.pallas import tpu as pltpu

# "FLAGS" — deterministic synthetic hyper-parameters (module __init__).
DISCOUNT = 0.99
L2NORM = 1e-3
# TAU / RATE / OUTHETA / OUSIGMA are read in __init__ but unused in forward().


def adam_loss_kernel(act_ref,      # VMEM (A, TB)  activations, batch on lanes
                     act_t_ref,    # VMEM (A, TB)  target activations
                     negq_ref,     # VMEM (1, TB)
                     negq_t_ref,   # VMEM (1, TB)
                     rew_ref,      # VMEM (1, TB)
                     term_ref,     # VMEM (1, TB)  0/1 float mask
                     td_ref):      # VMEM (1, TB)  td_error output (lane-dense)
    def entropy(x):                                   # x: (A, TB)
        p = jnp.clip((x + 1.0) * 0.5, 0.0001, 0.9999)
        pen = p * jnp.log(p) + (1.0 - p) * jnp.log(1.0 - p)
        return -jnp.sum(pen, axis=0, keepdims=True)   # sublane reduce -> (1, TB)

    ent_a = entropy(act_ref[...])
    ent_t = entropy(act_t_ref[...])

    q_entr = ent_a - negq_ref[...]        # = -(negQ - entropy(act))
    q_t_entr = ent_t - negq_t_ref[...]    # = -(negQ_target - entropy(act_target))

    rew = rew_ref[...]
    y = jnp.where(term_ref[...] > 0.5, rew, rew + DISCOUNT * q_t_entr)
    y = jnp.minimum(q_entr + 1.0, jnp.maximum(q_entr - 1.0, y))
    td_ref[...] = q_entr - y


def _choose_block_b(B, A):
    """Lane-block size: whole batch if tiny, else a 128-multiple sized against
    a v7x-safe (64 MiB VMEM) double-buffered working set."""
    if B <= 128:
        return B                               # block == full array dim: legal
    budget = 24 << 20                          # bytes, per-block working set (x2 buffered)
    per_lane = 4 * (2 * A + 5 * 8)             # 2 act tiles + 5 sublane-padded (1,TB) tiles
    tb = (budget // (2 * per_lane)) // 128 * 128
    tb = max(128, min(tb, 8192))
    tb = min(tb, ((B + 127) // 128) * 128)     # don't exceed the 128-rounded batch
    return int(tb)


def adam_loss(negQ, act, negQ_target, act_target, rew, term_mask, reg_sum,
              *, block_b=None):
    """act / act_target are (A, B) batch-minor (batch rides the lane axis);
    negQ / negQ_target / rew / term_mask are (B,); reg_sum is sum(regLosses).
    Returns (loss_q, td_error)."""
    A, B = act.shape
    f32 = jnp.float32

    tb = _choose_block_b(B, A) if block_b is None else int(block_b)
    grid = (pl.cdiv(B, tb),)

    act = act.astype(f32)
    act_target = act_target.astype(f32)
    row = lambda v: v.astype(f32).reshape(1, B)     # free (B,) -> (1, B) view

    def lane_spec(rows):
        return pl.BlockSpec((rows, tb), lambda i: (0, i))

    # Double-buffered per-block VMEM estimate; lift scoped limit with headroom
    # (v5e default is only 16 MiB; keep <= 48 MiB so v7x's 64 MiB is never hit).
    blk_bytes = 2 * 4 * tb * (2 * A + 5 * 8)
    vmem_limit = int(min(max(4 * blk_bytes, 32 << 20), 48 << 20))

    cost = pl.CostEstimate(
        flops=int(20 * A * B + 10 * B),           # clip/mul/add per packed element + epilogue
        transcendentals=int(4 * A * B),           # 2 logs per element of act and act_target
        bytes_accessed=int(4 * (2 * A * B + 5 * B)),
    )

    td2d = pl.pallas_call(
        adam_loss_kernel,
        out_shape=jax.ShapeDtypeStruct((1, B), f32),
        grid=grid,
        in_specs=[lane_spec(A), lane_spec(A),
                  lane_spec(1), lane_spec(1), lane_spec(1), lane_spec(1)],
        out_specs=lane_spec(1),
        compiler_params=pltpu.CompilerParams(
            dimension_semantics=("parallel",),     # independent blocks -> both TCs on v7x
            vmem_limit_bytes=vmem_limit),
        cost_estimate=cost,
    )(act, act_target, row(negQ), row(negQ_target), row(rew), row(term_mask))

    td = td2d[0]
    # Finalize exactly once, over the true global batch (tail-block padding in
    # the kernel never reaches the (1, B) output array): reg added once here.
    loss = jnp.mean(td * td) + L2NORM * jnp.asarray(reg_sum, f32)
    return loss, td


def _reference(negQ, act, negQ_target, act_target, rew, term_mask, reg_sum):
    """Pure-JAX reference; act/act_target in the same (A, B) layout."""
    def ent(x):
        p = jnp.clip((x + 1.0) / 2.0, 0.0001, 0.9999)
        return -jnp.sum(p * jnp.log(p) + (1 - p) * jnp.log(1 - p), axis=0)
    q_entr = -(negQ - ent(act))
    q_t_entr = -(negQ_target - ent(act_target))
    y = jnp.where(term_mask > 0.5, rew, rew + DISCOUNT * q_t_entr)
    y = jnp.minimum(q_entr + 1.0, jnp.maximum(q_entr - 1.0, y))
    td = q_entr - y
    return jnp.mean(td * td) + L2NORM * reg_sum, td


if __name__ == "__main__":
    key = jax.random.PRNGKey(0)

    def make_inputs(k, B, A, H):
        ks = jax.random.split(k, 8)
        # Producer emits (A, B)-major activations so the kernel path needs no
        # wrapper-side transpose/concat HBM passes.
        act = jnp.tanh(jax.random.normal(ks[0], (A, B), jnp.float32))
        act_target = jnp.tanh(jax.random.normal(ks[1], (A, B), jnp.float32))
        negQ = jax.random.normal(ks[2], (B,), jnp.float32)
        negQ_target = jax.random.normal(ks[3], (B,), jnp.float32)
        rew = jax.random.normal(ks[4], (B,), jnp.float32)
        term_mask = (jax.random.uniform(ks[5], (B,)) < 0.3).astype(jnp.float32)
        # Synthetic critic weights -> sum of L2 reg losses (deterministic).
        w1 = jax.random.normal(ks[6], (A, H), jnp.float32) * 0.1
        w2 = jax.random.normal(ks[7], (H, 1), jnp.float32) * 0.1
        reg_sum = jnp.sum(w1 * w1) + jnp.sum(w2 * w2)
        return negQ, act, negQ_target, act_target, rew, term_mask, reg_sum

    k1, k2 = jax.random.split(key)

    # 1) Small single-block case (B = 8, A = 16).
    args = make_inputs(k1, B=8, A=16, H=32)
    loss, td = adam_loss(*args)
    jax.block_until_ready((loss, td))
    ref_loss, ref_td = _reference(*args)
    assert jnp.allclose(loss, ref_loss, atol=1e-5, rtol=1e-5)
    assert jnp.allclose(td, ref_td, atol=1e-5, rtol=1e-5)

    # 2) Gridded case: 3 parallel lane blocks of 128 over B = 320 (ragged tail
    #    block exercises edge padding + the wrapper-side global finalize).
    args = make_inputs(k2, B=320, A=16, H=32)
    loss, td = adam_loss(*args, block_b=128)
    jax.block_until_ready((loss, td))
    ref_loss, ref_td = _reference(*args)
    assert jnp.allclose(loss, ref_loss, atol=1e-5, rtol=1e-5)
    assert jnp.allclose(td, ref_td, atol=1e-5, rtol=1e-5)

    print("KERNEL_OK")
</pallas_src>

<mosaic_0001>
module attributes {stable_mosaic.version = 11 : i64} {
  func.func @adam_loss_kernel(%arg0: i32, %arg1: memref<16x8xf32, #tpu.memory_space<vmem>>, %arg2: memref<16x8xf32, #tpu.memory_space<vmem>>, %arg3: memref<1x8xf32, #tpu.memory_space<vmem>>, %arg4: memref<1x8xf32, #tpu.memory_space<vmem>>, %arg5: memref<1x8xf32, #tpu.memory_space<vmem>>, %arg6: memref<1x8xf32, #tpu.memory_space<vmem>>, %arg7: memref<1x8xf32, #tpu.memory_space<vmem>>) attributes {dimension_semantics = [#tpu.dimension_semantics<parallel>], iteration_bounds = array<i64: 1>, scalar_prefetch = 0 : i64, scratch_operands = 0 : i64, tpu.core_type = #tpu.core_type<tc>, window_params = [{transform_indices = @transform_0, window_bounds = array<i64: 16, 8>}, {transform_indices = @transform_1, window_bounds = array<i64: 16, 8>}, {transform_indices = @transform_2, window_bounds = array<i64: 1, 8>}, {transform_indices = @transform_3, window_bounds = array<i64: 1, 8>}, {transform_indices = @transform_4, window_bounds = array<i64: 1, 8>}, {transform_indices = @transform_5, window_bounds = array<i64: 1, 8>}, {transform_indices = @transform_6, window_bounds = array<i64: 1, 8>}]} {
    %c0 = arith.constant 0 : index
    %c0_0 = arith.constant 0 : index
    %0 = vector.load %arg1[%c0, %c0_0] : memref<16x8xf32, #tpu.memory_space<vmem>>, vector<16x8xf32>
    %cst = arith.constant 1.000000e+00 : f32
    %1 = vector.broadcast %cst : f32 to vector<16x8xf32>
    %2 = arith.addf %0, %1 : vector<16x8xf32>
    %cst_1 = arith.constant 5.000000e-01 : f32
    %3 = vector.broadcast %cst_1 : f32 to vector<16x8xf32>
    %4 = arith.mulf %2, %3 : vector<16x8xf32>
    %cst_2 = arith.constant 9.99999974E-5 : f32
    %cst_3 = arith.constant 0.999899983 : f32
    %5 = vector.broadcast %cst_2 : f32 to vector<16x8xf32>
    %6 = arith.maximumf %5, %4 : vector<16x8xf32>
    %7 = vector.broadcast %cst_3 : f32 to vector<16x8xf32>
    %8 = arith.minimumf %7, %6 : vector<16x8xf32>
    %9 = math.log %8 : vector<16x8xf32>
    %10 = arith.mulf %8, %9 : vector<16x8xf32>
    %cst_4 = arith.constant 1.000000e+00 : f32
    %11 = vector.broadcast %cst_4 : f32 to vector<16x8xf32>
    %12 = arith.subf %11, %8 : vector<16x8xf32>
    %cst_5 = arith.constant 1.000000e+00 : f32
    %13 = vector.broadcast %cst_5 : f32 to vector<16x8xf32>
    %14 = arith.subf %13, %8 : vector<16x8xf32>
    %15 = math.log %14 : vector<16x8xf32>
    %16 = arith.mulf %12, %15 : vector<16x8xf32>
    %17 = arith.addf %10, %16 : vector<16x8xf32>
    %cst_6 = arith.constant dense<0.000000e+00> : vector<8xf32>
    %18 = vector.multi_reduction <add>, %17, %cst_6 [0] : vector<16x8xf32> to vector<8xf32>
    %19 = vector.shape_cast %18 : vector<8xf32> to vector<1x8xf32>
    %cst_7 = arith.constant 0.000000e+00 : f32
    %20 = vector.broadcast %cst_7 : f32 to vector<1x8xf32>
    %21 = arith.subf %20, %19 : vector<1x8xf32>
    %c0_8 = arith.constant 0 : index
    %c0_9 = arith.constant 0 : index
    %22 = vector.load %arg2[%c0_8, %c0_9] : memref<16x8xf32, #tpu.memory_space<vmem>>, vector<16x8xf32>
    %cst_10 = arith.constant 1.000000e+00 : f32
    %23 = vector.broadcast %cst_10 : f32 to vector<16x8xf32>
    %24 = arith.addf %22, %23 : vector<16x8xf32>
    %cst_11 = arith.constant 5.000000e-01 : f32
    %25 = vector.broadcast %cst_11 : f32 to vector<16x8xf32>
    %26 = arith.mulf %24, %25 : vector<16x8xf32>
    %cst_12 = arith.constant 9.99999974E-5 : f32
    %cst_13 = arith.constant 0.999899983 : f32
    %27 = vector.broadcast %cst_12 : f32 to vector<16x8xf32>
    %28 = arith.maximumf %27, %26 : vector<16x8xf32>
    %29 = vector.broadcast %cst_13 : f32 to vector<16x8xf32>
    %30 = arith.minimumf %29, %28 : vector<16x8xf32>
    %31 = math.log %30 : vector<16x8xf32>
    %32 = arith.mulf %30, %31 : vector<16x8xf32>
    %cst_14 = arith.constant 1.000000e+00 : f32
    %33 = vector.broadcast %cst_14 : f32 to vector<16x8xf32>
    %34 = arith.subf %33, %30 : vector<16x8xf32>
    %cst_15 = arith.constant 1.000000e+00 : f32
    %35 = vector.broadcast %cst_15 : f32 to vector<16x8xf32>
    %36 = arith.subf %35, %30 : vector<16x8xf32>
    %37 = math.log %36 : vector<16x8xf32>
    %38 = arith.mulf %34, %37 : vector<16x8xf32>
    %39 = arith.addf %32, %38 : vector<16x8xf32>
    %cst_16 = arith.constant dense<0.000000e+00> : vector<8xf32>
    %40 = vector.multi_reduction <add>, %39, %cst_16 [0] : vector<16x8xf32> to vector<8xf32>
    %41 = vector.shape_cast %40 : vector<8xf32> to vector<1x8xf32>
    %cst_17 = arith.constant 0.000000e+00 : f32
    %42 = vector.broadcast %cst_17 : f32 to vector<1x8xf32>
    %43 = arith.subf %42, %41 : vector<1x8xf32>
    %c0_18 = arith.constant 0 : index
    %c0_19 = arith.constant 0 : index
    %44 = vector.load %arg3[%c0_18, %c0_19] : memref<1x8xf32, #tpu.memory_space<vmem>>, vector<1x8xf32>
    %45 = arith.subf %21, %44 : vector<1x8xf32>
    %c0_20 = arith.constant 0 : index
    %c0_21 = arith.constant 0 : index
    %46 = vector.load %arg4[%c0_20, %c0_21] : memref<1x8xf32, #tpu.memory_space<vmem>>, vector<1x8xf32>
    %47 = arith.subf %43, %46 : vector<1x8xf32>
    %c0_22 = arith.constant 0 : index
    %c0_23 = arith.constant 0 : index
    %48 = vector.load %arg5[%c0_22, %c0_23] : memref<1x8xf32, #tpu.memory_space<vmem>>, vector<1x8xf32>
    %c0_24 = arith.constant 0 : index
    %c0_25 = arith.constant 0 : index
    %49 = vector.load %arg6[%c0_24, %c0_25] : memref<1x8xf32, #tpu.memory_space<vmem>>, vector<1x8xf32>
    %cst_26 = arith.constant 5.000000e-01 : f32
    %50 = vector.broadcast %cst_26 : f32 to vector<1x8xf32>
    %51 = arith.cmpf ogt, %49, %50 : vector<1x8xf32>
    %cst_27 = arith.constant 9.900000e-01 : f32
    %52 = vector.broadcast %cst_27 : f32 to vector<1x8xf32>
    %53 = arith.mulf %52, %47 : vector<1x8xf32>
    %54 = arith.addf %48, %53 : vector<1x8xf32>
    %55 = arith.select %51, %48, %54 : vector<1x8xi1>, vector<1x8xf32>
    %cst_28 = arith.constant 1.000000e+00 : f32
    %56 = vector.broadcast %cst_28 : f32 to vector<1x8xf32>
    %57 = arith.addf %45, %56 : vector<1x8xf32>
    %cst_29 = arith.constant 1.000000e+00 : f32
    %58 = vector.broadcast %cst_29 : f32 to vector<1x8xf32>
    %59 = arith.subf %45, %58 : vector<1x8xf32>
    %60 = arith.maximumf %59, %55 : vector<1x8xf32>
    %61 = arith.minimumf %57, %60 : vector<1x8xf32>
    %62 = arith.subf %45, %61 : vector<1x8xf32>
    %c0_30 = arith.constant 0 : index
    %c0_31 = arith.constant 0 : index
    %63 = vector.load %arg7[%c0_30, %c0_31] : memref<1x8xf32, #tpu.memory_space<vmem>>, vector<1x8xf32>
    tpu.vector_store %arg7[%c0_30, %c0_31], %62 {strides = array<i32>} : memref<1x8xf32, #tpu.memory_space<vmem>>, vector<1x8xf32>,
    return
  }
  func.func @transform_0(%arg0: i32) -> (i32, i32) {
    %c0_i32 = arith.constant 0 : i32
    %c0_i32_0 = arith.constant 0 : i32
    return %c0_i32, %arg0 : i32, i32
  }
  func.func @transform_1(%arg0: i32) -> (i32, i32) {
    %c0_i32 = arith.constant 0 : i32
    %c0_i32_0 = arith.constant 0 : i32
    return %c0_i32, %arg0 : i32, i32
  }
  func.func @transform_2(%arg0: i32) -> (i32, i32) {
    %c0_i32 = arith.constant 0 : i32
    %c0_i32_0 = arith.constant 0 : i32
    return %c0_i32, %arg0 : i32, i32
  }
  func.func @transform_3(%arg0: i32) -> (i32, i32) {
    %c0_i32 = arith.constant 0 : i32
    %c0_i32_0 = arith.constant 0 : i32
    return %c0_i32, %arg0 : i32, i32
  }
  func.func @transform_4(%arg0: i32) -> (i32, i32) {
    %c0_i32 = arith.constant 0 : i32
    %c0_i32_0 = arith.constant 0 : i32
    return %c0_i32, %arg0 : i32, i32
  }
  func.func @transform_5(%arg0: i32) -> (i32, i32) {
    %c0_i32 = arith.constant 0 : i32
    %c0_i32_0 = arith.constant 0 : i32
    return %c0_i32, %arg0 : i32, i32
  }
  func.func @transform_6(%arg0: i32) -> (i32, i32) {
    %c0_i32 = arith.constant 0 : i32
    %c0_i32_0 = arith.constant 0 : i32
    return %c0_i32, %arg0 : i32, i32
  }
}

</mosaic_0001>

<bundles_post_ra>
// kernel: tpu_custom_call.1
= control target key start
LH: loop header
LB: loop body
LE: loop exit
PB: predicated region body
PF: predicated region fallthrough
CT: control target
= control target key end

     0   :  { %s242_s0 = inlined_call_operand.vmem [shape: f32[16,8], index: 0, kind: input, shape index: {}]   ;;  %s243_s1 = inlined_call_operand.vmem [shape: f32[16,8], index: 1, kind: input, shape index: {}]   ;;  %s244_s2 = inlined_call_operand.vmem [shape: f32[1,8], index: 2, kind: input, shape index: {}]   ;;  %s245_s3 = inlined_call_operand.vmem [shape: f32[1,8], index: 3, kind: input, shape index: {}]   ;;  %s246_s4 = inlined_call_operand.vmem [shape: f32[1,8], index: 4, kind: input, shape index: {}]   ;;  %s247_s5 = inlined_call_operand.vmem [shape: f32[1,8], index: 5, kind: input, shape index: {}]   ;;  %s248_s6 = inlined_call_operand.hbm [shape: f32[1,8], index: 6, kind: output, shape index: {}]  }
   0x1   :  { %v24_v0 = vld [vmem:[%s242_s0] sm:$0xff]  ;;  %v25_v1 = vld [vmem:[%s242_s0 + $0x8] sm:$0xff] }
   0x2   :  { %v61_v2 = vld [vmem:[%s243_s1] sm:$0xff]  ;;  %v26_v3 = vadd.f32 1.0, %v24_v0  ;;  %v27_v4 = vadd.f32 1.0, %v25_v1  ;;  %v62_v5 = vld [vmem:[%s243_s1 + $0x8] sm:$0xff] }
   0x3   :  { %v63_v6 = vadd.f32 1.0, %v61_v2  ;;  %v64_v7 = vadd.f32 1.0, %v62_v5 }
   0x4   :  { %v28_v8 = vmul.f32 0.5, %v26_v3  ;;  %v29_v9 = vmul.f32 0.5, %v27_v4 }
   0x5   :  { %v65_v10 = vmul.f32 0.5, %v63_v6  ;;  %v66_v11 = vmul.f32 0.5, %v64_v7 }
   0x6   :  { %11 = vsyncpa [#allocation3], 0  ;;  %v30_v12 = vmax.f32 %v28_v8, 0.0001  ;;  %v31_v13 = vmax.f32 %v29_v9, 0.0001 }
   0x7   :  { %v67_v14 = vmax.f32 %v65_v10, 0.0001  ;;  %v68_v15 = vmax.f32 %v66_v11, 0.0001  ;;  %vm50_vm0 = vcmask 64512   ;;  %vm112_vm2 = vcmask 57344  }
   0x8   :  { %v32_v16 = vmin.f32 %v30_v12, 0.9999  ;;  %v33_v17 = vmin.f32 %v31_v13, 0.9999  ;;  %v97_v7 = vld [vmem:[%s244_s2] sm:$0x1] }
   0x9   :  { %v69_v18 = vmin.f32 %v67_v14, 0.9999  ;;  %v70_v19 = vmin.f32 %v68_v15, 0.9999  ;;  %v99_v8 = vld [vmem:[%s245_s3] sm:$0x1] }
   0xa   :  { %130 = vlog2.f32 %v32_v16  ;;  %v40_v20 = vsub.f32 1.0, %v32_v16  ;;  %v41_v21 = vsub.f32 1.0, %v33_v17  ;;  %v102_v12 = vld [vmem:[%s247_s5] sm:$0x1]  ;;  %s170_s2 = smov [#allocation2]  }
   0xb   :  { %132 = vlog2.f32 %v33_v17  ;;  %v77_v22 = vsub.f32 1.0, %v69_v18  ;;  %v78_v23 = vsub.f32 1.0, %v70_v19  ;;  %v101_v13 = vld [vmem:[%s246_s4] sm:$0x1]  ;;  %vm103_vm1 = vcmp.gt.f32.partialorder %v102_v12, 0.5  ;;  %s120_s3 = sshll.u32 %s170_s2, 4  ;;  %s121_s3 = int_to_ptr.vmem [resolvable:$true] %s120_s3 }
   0xc   :  { %134 = vlog2.f32 %v40_v20  ;;  %s146_s11 = scalar_lea.vmem %s121_s3, 16  ;;  %s150_s5 = scalar_lea.vmem %s121_s3, 32 }
   0xd   :  { %136 = vlog2.f32 %v41_v21  ;;  %p147_p0 = scmp.ne.s32.totalorder %s121_s3, %s146_s11  ;;  %p151_p1 = scmp.lt.s32.totalorder %s121_s3, %s121_s3 }
   0xe   :  { %138 = vlog2.f32 %v69_v18  ;;  %p152_p2 = scmp.lt.s32.totalorder %s150_s5, %s146_s11 }
   0xf   :  { %140 = vlog2.f32 %v70_v19 }
  0x10   :  { %142 = vlog2.f32 %v77_v22  ;;  %p153_p3 = por %p152_p2, %p151_p1 }
  0x11   :  { %144 = vlog2.f32 %v78_v23 }
  0x12   :  { %p154_p4 = pnand %p153_p3, %p147_p0 }
  0x14   :  { %v131_v24 = vpop.eup %130 }
  0x15   :  { %v133_v25 = vpop.eup %132  ;;  %v35_v26 = vmul.f32 0.6931472, %v131_v24 }
  0x16   :  { %v135_v27 = vpop.eup %134  ;;  %v37_v28 = vmul.f32 0.6931472, %v133_v25 }
  0x17   :  { %v137_v29 = vpop.eup %136  ;;  %v38_v30 = vmul.f32 %v35_v26, %v32_v16  ;;  %v43_v31 = vmul.f32 0.6931472, %v135_v27 }
  0x18   :  { %v139_v32 = vpop.eup %138  ;;  %v39_v33 = vmul.f32 %v37_v28, %v33_v17  ;;  %v45_v34 = vmul.f32 0.6931472, %v137_v29 }
  0x19   :  { %v141_v35 = vpop.eup %140  ;;  %v46_v36 = vmul.f32 %v43_v31, %v40_v20  ;;  %v72_v37 = vmul.f32 0.6931472, %v139_v32 }
  0x1a   :  { %v143_v38 = vpop.eup %142  ;;  %v47_v39 = vmul.f32 %v45_v34, %v41_v21  ;;  %v74_v40 = vmul.f32 0.6931472, %v141_v35 }
  0x1b   :  { %v145_v41 = vpop.eup %144  ;;  %v48_v42 = vadd.f32 %v46_v36, %v38_v30  ;;  %v75_v43 = vmul.f32 %v72_v37, %v69_v18  ;;  %v80_v44 = vmul.f32 0.6931472, %v143_v38 }
  0x1c   :  { %v49_v45 = vadd.f32 %v47_v39, %v39_v33  ;;  %v76_v46 = vmul.f32 %v74_v40, %v70_v19  ;;  %v82_v47 = vmul.f32 0.6931472, %v145_v41 }
  0x1d   :  { %v51_v48 = vsel %vm50_vm0, %v48_v42, 0.0  ;;  %v83_v49 = vmul.f32 %v80_v44, %v77_v22 }
  0x1e   :  { %v52_v50 = vsel %vm50_vm0, %v49_v45, 0.0  ;;  %v84_v51 = vmul.f32 %v82_v47, %v78_v23 }
  0x1f   :  { %v53_v52 = vadd.f32 %v52_v50, %v51_v48  ;;  %v85_v53 = vadd.f32 %v83_v49, %v75_v43 }
  0x20   :  { %v86_v54 = vadd.f32 %v84_v51, %v76_v46 }
  0x21   :  { %v54_v55 = vrot.slane %v53_v52, 4  ;;  %v87_v56 = vsel %vm50_vm0, %v85_v53, 0.0 }
  0x22   :  { %v88_v57 = vsel %vm50_vm0, %v86_v54, 0.0 }
  0x23   :  { %v55_v58 = vadd.f32 %v54_v55, %v53_v52  ;;  %v89_v59 = vadd.f32 %v88_v57, %v87_v56 }
  0x25   :  { %v56_v60 = vrot.slane %v55_v58, 2  ;;  %v90_v61 = vrot.slane %v89_v59, 4 }
  0x27   :  { %v57_v62 = vadd.f32 %v56_v60, %v55_v58  ;;  %v91_v63 = vadd.f32 %v90_v61, %v89_v59 }
  0x29   :  { %v58_v0 = vrot.slane %v57_v62, 1  ;;  %v92_v1 = vrot.slane %v91_v63, 2 }
  0x2b   :  { %v59_v2 = vadd.f32 %v58_v0, %v57_v62  ;;  %v93_v3 = vadd.f32 %v92_v1, %v91_v63 }
  0x2d   :  { %v94_v4 = vrot.slane %v93_v3, 1  ;;  %v60_v5 = vsub.f32 0.0, %v59_v2 }
  0x2f   :  { %v95_v6 = vadd.f32 %v94_v4, %v93_v3  ;;  %v98_v10 = vsub.f32 %v60_v5, %v97_v7 }
  0x31   :  { %v96_v9 = vsub.f32 0.0, %v95_v6  ;;  %v128_v15 = vadd.f32 -1.0, %v98_v10  ;;  %v107_v17 = vadd.f32 1.0, %v98_v10 }
  0x33   :  { %v100_v11 = vsub.f32 %v96_v9, %v99_v8 }
  0x35   :  { %v104_v14 = vmul.f32 0.99, %v100_v11 }
  0x37   :  { %v105_v16 = vadd.f32 %v104_v14, %v101_v13 }
  0x39   :  { %v106_v18 = vsel %vm103_vm1, %v101_v13, %v105_v16 }
  0x3a   :  { %v109_v19 = vmax.f32 %v128_v15, %v106_v18 }
  0x3c   :  { %v110_v20 = vmin.f32 %v107_v17, %v109_v19 }
  0x3e   :  { %v111_v21 = vsub.f32 %v98_v10, %v110_v20 }
  0x40   :  { %113 = vst.msk [vmem:[#allocation2] sm:$0x1] %vm112_vm2, %v111_v21 }
  0x41   :  { %157 = shalt.err (!%p154_p4)
}
  0x42   :  { %s158_s13 = scalar_lea.hbm %s248_s6, 16 }
  0x43   :  { %p159_p5 = scmp.ne.s32.totalorder %s248_s6, %s158_s13  ;;  %p162_p6 = scmp.lt.u32.totalorder %s158_s13, %s248_s6 }
  0x45   :  { %p164_p7 = pnand %p162_p6, %p159_p5 }
  0x47   :  { %167 = shalt.err (!%p164_p7)
}
  0x48   :  { %123 = dma.vmem_to_hbm [thread:$0]  %s121_s3, 16, %s248_s6, [#allocation3]  }
  0x49   :  { %168 = dma.done.wait [#allocation3], 16  }
  0x4a   :  { %169 = vsyncadd [#allocation3], 4294967280 }
  0x4b   :  { %127 = vsyncpa [#allocation3], 1 }

</bundles_post_ra>
